<compile_context>
chip_gen: v5e
topology: v5e:2x2
jax: 0.10.0
libtpu: 0.0.40
codegen_flags: <defaults>
</compile_context>

<pallas_src>
import functools
import math

import jax
import jax.numpy as jnp
from jax import lax
from jax.experimental import pallas as pl
from jax.experimental.pallas import tpu as pltpu

_VMEM_LIMIT = 48 * 1024 * 1024  # <= v7x's 64 MiB physical VMEM per TensorCore


def _round_up(x, m):
    return (x + m - 1) // m * m


# ---------------------------------------------------------------------------
# Pallas kernels
# ---------------------------------------------------------------------------
def _matmul_bn_kernel(a_ref, b_ref, scale_ref, shift_ref, o_ref, acc_ref, *, relu):
    """Tiled matmul with fused inference-BN (+ReLU) epilogue."""
    @pl.when(pl.program_id(2) == 0)
    def _():
        acc_ref[...] = jnp.zeros_like(acc_ref)

    acc_ref[...] += jnp.dot(a_ref[...], b_ref[...],
                            preferred_element_type=jnp.float32)

    @pl.when(pl.program_id(2) == pl.num_programs(2) - 1)
    def _():
        y = acc_ref[...] * scale_ref[...] + shift_ref[...]
        if relu:
            y = jnp.maximum(y, 0.0)
        o_ref[...] = y


def _matmul_bn_res_kernel(a_ref, b_ref, scale_ref, shift_ref, r_ref, o_ref,
                          acc_ref, *, relu):
    """Tiled matmul with fused BN + residual add (+ReLU) epilogue."""
    @pl.when(pl.program_id(2) == 0)
    def _():
        acc_ref[...] = jnp.zeros_like(acc_ref)

    acc_ref[...] += jnp.dot(a_ref[...], b_ref[...],
                            preferred_element_type=jnp.float32)

    @pl.when(pl.program_id(2) == pl.num_programs(2) - 1)
    def _():
        y = acc_ref[...] * scale_ref[...] + shift_ref[...] + r_ref[...]
        if relu:
            y = jnp.maximum(y, 0.0)
        o_ref[...] = y


def _max9_kernel(x_ref, o_ref):
    # x_ref: (9, rows_tile, C) -> elementwise max over the 9 pooling-window taps.
    acc = x_ref[0]
    for t in range(1, 9):
        acc = jnp.maximum(acc, x_ref[t])
    o_ref[...] = acc


def _head_kernel(f_ref, w_ref, b_ref, o_ref):
    # f_ref: (Npad, 2048) bf16; w_ref: (2048, dim) bf16; b_ref: (1, dim) f32.
    emb = jnp.dot(f_ref[...], w_ref[...],
                  preferred_element_type=jnp.float32) + b_ref[...]
    nsq = jnp.sum(emb * emb, axis=1, keepdims=True)
    # f.normalize(p=2, dim=1): x / max(||x||, 1e-12)  ==  x * rsqrt(max(||x||^2, 1e-24))
    o_ref[...] = emb * lax.rsqrt(jnp.maximum(nsq, 1e-24))


# ---------------------------------------------------------------------------
# Tiled matmul + fused BN wrapper
# ---------------------------------------------------------------------------
def _pick_tk(kp):
    if kp <= 1024:
        return kp
    for d in (1024, 768, 512, 384, 256, 128):
        if kp % d == 0:
            return d
    return 128  # unreachable: kp is always a multiple of 128 here


def _fused_matmul_bn(cols, w, scale, shift, residual=None, *, relu=True):
    """cols: (M, K) bf16; w: (K, N) bf16; scale/shift: (N,) f32;
    residual: optional (M, N) f32. Returns (M, N) f32 = act(cols@w * scale + shift [+ res])."""
    m, k = cols.shape
    _, n = w.shape

    kp = _round_up(k, 128) if k >= 128 else k
    tk = _pick_tk(kp) if kp >= 128 else kp
    tm = min(256, _round_up(m, 8))
    mp = _round_up(m, tm)
    tn = n if (n % 128) != 0 else min(256, n)
    np_ = _round_up(n, tn)

    cols_p = jnp.pad(cols, ((0, mp - m), (0, kp - k)))
    w_p = jnp.pad(w, ((0, kp - k), (0, np_ - n)))
    scale_p = jnp.pad(scale.reshape(1, n), ((0, 0), (0, np_ - n)))
    shift_p = jnp.pad(shift.reshape(1, n), ((0, 0), (0, np_ - n)))

    grid = (mp // tm, np_ // tn, kp // tk)
    a_spec = pl.BlockSpec((tm, tk), lambda i, j, kk: (i, kk))
    b_spec = pl.BlockSpec((tk, tn), lambda i, j, kk: (kk, j))
    v_spec = pl.BlockSpec((1, tn), lambda i, j, kk: (0, j))
    o_spec = pl.BlockSpec((tm, tn), lambda i, j, kk: (i, j))
    params = pltpu.CompilerParams(
        dimension_semantics=("parallel", "parallel", "arbitrary"),
        vmem_limit_bytes=_VMEM_LIMIT)
    scratch = [pltpu.VMEM((tm, tn), jnp.float32)]

    if residual is None:
        out = pl.pallas_call(
            functools.partial(_matmul_bn_kernel, relu=relu),
            out_shape=jax.ShapeDtypeStruct((mp, np_), jnp.float32),
            grid=grid,
            in_specs=[a_spec, b_spec, v_spec, v_spec],
            out_specs=o_spec,
            scratch_shapes=scratch,
            compiler_params=params,
        )(cols_p, w_p, scale_p, shift_p)
    else:
        res_p = jnp.pad(residual, ((0, mp - m), (0, np_ - n)))
        out = pl.pallas_call(
            functools.partial(_matmul_bn_res_kernel, relu=relu),
            out_shape=jax.ShapeDtypeStruct((mp, np_), jnp.float32),
            grid=grid,
            in_specs=[a_spec, b_spec, v_spec, v_spec, o_spec],
            out_specs=o_spec,
            scratch_shapes=scratch,
            compiler_params=params,
        )(cols_p, w_p, scale_p, shift_p, res_p)
    return out[:m, :n]


# ---------------------------------------------------------------------------
# Conv (+BN+ReLU[+residual]), max-pool, head wrappers (JAX glue around Pallas)
# ---------------------------------------------------------------------------
def _im2col(x, kh, kw, stride, padding):
    """x: (N, H, W, Cin) -> (N*Ho*Wo, KH*KW*Cin), plus (Ho, Wo)."""
    n, h, wdt, cin = x.shape
    if kh == 1 and kw == 1 and padding == 0:
        ho = (h - 1) // stride + 1
        wo = (wdt - 1) // stride + 1
        cols = x[:, ::stride, ::stride, :].reshape(n * ho * wo, cin)
        return cols, ho, wo
    xp = jnp.pad(x, ((0, 0), (padding, padding), (padding, padding), (0, 0)))
    ho = (h + 2 * padding - kh) // stride + 1
    wo = (wdt + 2 * padding - kw) // stride + 1
    taps = []
    for i in range(kh):
        for j in range(kw):
            taps.append(xp[:, i:i + (ho - 1) * stride + 1:stride,
                           j:j + (wo - 1) * stride + 1:stride, :])
    cols = jnp.concatenate(taps, axis=-1).reshape(n * ho * wo, kh * kw * cin)
    return cols, ho, wo


@functools.partial(jax.jit, static_argnames=("stride", "padding", "relu"))
def conv_bn(x, w, bn, residual=None, *, stride, padding, relu=True):
    """Conv2d + inference BatchNorm (+ residual) (+ ReLU), all fused in one Pallas matmul."""
    n = x.shape[0]
    kh, kw, cin, cout = w.shape
    gamma, beta, mean, var = bn
    scale = gamma * lax.rsqrt(var + 1e-5)          # folded BN scale
    shift = beta - mean * scale                    # folded BN shift
    cols, ho, wo = _im2col(x.astype(jnp.bfloat16), kh, kw, stride, padding)
    w2 = w.reshape(kh * kw * cin, cout).astype(jnp.bfloat16)
    res2 = None if residual is None else residual.reshape(n * ho * wo, cout)
    out = _fused_matmul_bn(cols, w2, scale, shift, res2, relu=relu)
    return out.reshape(n, ho, wo, cout)


@jax.jit
def maxpool_3x3_s2_p1(x):
    n, h, w, c = x.shape
    xp = jnp.pad(x, ((0, 0), (1, 1), (1, 1), (0, 0)), constant_values=-jnp.inf)
    ho = (h + 2 - 3) // 2 + 1
    wo = (w + 2 - 3) // 2 + 1
    taps = []
    for i in range(3):
        for j in range(3):
            taps.append(xp[:, i:i + 2 * (ho - 1) + 1:2,
                           j:j + 2 * (wo - 1) + 1:2, :])
    rows = n * ho * wo
    tr = min(512, _round_up(rows, 8))
    rp = _round_up(rows, tr)
    stacked = jnp.stack(taps, axis=0).reshape(9, rows, c)
    stacked = jnp.pad(stacked, ((0, 0), (0, rp - rows), (0, 0)))
    out = pl.pallas_call(
        _max9_kernel,
        out_shape=jax.ShapeDtypeStruct((rp, c), jnp.float32),
        grid=(rp // tr,),
        in_specs=[pl.BlockSpec((9, tr, c), lambda i: (0, i, 0))],
        out_specs=pl.BlockSpec((tr, c), lambda i: (i, 0)),
        compiler_params=pltpu.CompilerParams(
            dimension_semantics=("parallel",), vmem_limit_bytes=_VMEM_LIMIT),
    )(stacked)
    return out[:rows].reshape(n, ho, wo, c)


@jax.jit
def avgpool_linear_l2norm(x, w, b):
    """x: (N, H, W, 2048) -> adaptive avg pool + Linear(2048->dim) + L2 normalize -> (N, dim)."""
    n = x.shape[0]
    d = w.shape[1]
    feat = jnp.mean(x, axis=(1, 2))                # adaptive avg pool (done in XLA; tiny)
    npad = _round_up(n, 8)
    feat = jnp.pad(feat, ((0, npad - n), (0, 0))).astype(jnp.bfloat16)
    out = pl.pallas_call(
        _head_kernel,
        out_shape=jax.ShapeDtypeStruct((npad, d), jnp.float32),
        grid=(1,),
        in_specs=[pl.BlockSpec((npad, feat.shape[1]), lambda i: (0, 0)),
                  pl.BlockSpec(w.shape, lambda i: (0, 0)),
                  pl.BlockSpec((1, d), lambda i: (0, 0))],
        out_specs=pl.BlockSpec((npad, d), lambda i: (0, 0)),
        compiler_params=pltpu.CompilerParams(
            dimension_semantics=("arbitrary",), vmem_limit_bytes=_VMEM_LIMIT),
    )(feat, w.astype(jnp.bfloat16), b)
    return out[:n]


# ---------------------------------------------------------------------------
# ResNet-152 backbone + UniVSE head
# ---------------------------------------------------------------------------
def bottleneck(x, p):
    s = p["stride"]
    out = conv_bn(x, p["conv1"], p["bn1"], stride=1, padding=0, relu=True)
    out = conv_bn(out, p["conv2"], p["bn2"], stride=s, padding=1, relu=True)
    if "down_conv" in p:
        identity = conv_bn(x, p["down_conv"], p["down_bn"],
                           stride=s, padding=0, relu=False)
    else:
        identity = x
    # conv3 + bn3 + residual add + ReLU fused in one Pallas matmul
    return conv_bn(out, p["conv3"], p["bn3"], residual=identity,
                   stride=1, padding=0, relu=True)


def custom_resnet152_forward(x_nchw, params):
    """Mirrors CustomResNet152.forward: returns L2-normalized (batch, dim)."""
    x = jnp.transpose(x_nchw, (0, 2, 3, 1)).astype(jnp.float32)   # NCHW -> NHWC
    x = conv_bn(x, params["conv1"], params["bn1"], stride=2, padding=3, relu=True)
    x = maxpool_3x3_s2_p1(x)
    for stage in ("layer1", "layer2", "layer3", "layer4"):
        for blk in params[stage]:
            x = bottleneck(x, blk)
    return avgpool_linear_l2norm(x, params["fc_w"], params["fc_b"])


def make_params(key, dim=1024):
    """Deterministic synthetic ResNet-152 parameters + UniVSE linear head."""
    block_counts = (3, 8, 36, 3)          # ResNet-152
    widths = (64, 128, 256, 512)
    keys = iter(jax.random.split(key, 512))

    def conv_w(kh, kw, cin, cout):
        std = math.sqrt(2.0 / (kh * kw * cin))
        return std * jax.random.normal(next(keys), (kh, kw, cin, cout), jnp.float32)

    def bn_p(c):
        # (gamma, beta, running_mean, running_var)
        return (jnp.ones((c,), jnp.float32), jnp.zeros((c,), jnp.float32),
                jnp.zeros((c,), jnp.float32), jnp.ones((c,), jnp.float32))

    params = {"conv1": conv_w(7, 7, 3, 64), "bn1": bn_p(64)}
    inplanes = 64
    for si, (planes, nblocks) in enumerate(zip(widths, block_counts)):
        stage = []
        for bi in range(nblocks):
            stride = (1 if si == 0 else 2) if bi == 0 else 1
            blk = {
                "stride": stride,
                "conv1": conv_w(1, 1, inplanes, planes), "bn1": bn_p(planes),
                "conv2": conv_w(3, 3, planes, planes),   "bn2": bn_p(planes),
                "conv3": conv_w(1, 1, planes, 4 * planes),
                "bn3": bn_p(4 * planes),
            }
            if bi == 0:
                blk["down_conv"] = conv_w(1, 1, inplanes, 4 * planes)
                blk["down_bn"] = bn_p(4 * planes)
            stage.append(blk)
            inplanes = 4 * planes
        params[f"layer{si + 1}"] = stage

    # Last linear layer: same init as CustomResNet152.init_weights()
    r = math.sqrt(6.0) / math.sqrt(2048 + dim)
    params["fc_w"] = jax.random.uniform(next(keys), (2048, dim), jnp.float32,
                                        minval=-r, maxval=r)
    params["fc_b"] = jnp.zeros((1, dim), jnp.float32)
    return params


if __name__ == "__main__":
    key = jax.random.PRNGKey(0)
    pkey, xkey = jax.random.split(key)
    params = make_params(pkey, dim=1024)

    # Small NCHW input consistent with the module (module expects (B, 3, H, W)).
    x = jax.random.normal(xkey, (2, 3, 64, 64), jnp.float32)

    out = custom_resnet152_forward(x, params)
    out = jax.block_until_ready(out)

    assert out.shape == (2, 1024), out.shape
    norms = jnp.linalg.norm(out, axis=1)
    assert bool(jnp.all(jnp.isfinite(out)))
    assert bool(jnp.all(jnp.abs(norms - 1.0) < 1e-3)), norms
    print("KERNEL_OK")
</pallas_src>

<mosaic_0001>
module attributes {stable_mosaic.version = 11 : i64} {
  func.func @_matmul_bn_kernel(%arg0: i32, %arg1: i32, %arg2: i32, %arg3: memref<256x256xbf16, #tpu.memory_space<vmem>>, %arg4: memref<256x64xbf16, #tpu.memory_space<vmem>>, %arg5: memref<1x64xf32, #tpu.memory_space<vmem>>, %arg6: memref<1x64xf32, #tpu.memory_space<vmem>>, %arg7: memref<256x64xf32, #tpu.memory_space<vmem>>, %arg8: memref<256x64xf32, #tpu.memory_space<vmem>>) attributes {dimension_semantics = [#tpu.dimension_semantics<parallel>, #tpu.dimension_semantics<parallel>, #tpu.dimension_semantics<arbitrary>], iteration_bounds = array<i64: 8, 1, 1>, scalar_prefetch = 0 : i64, scratch_operands = 1 : i64, tpu.core_type = #tpu.core_type<tc>, window_params = [{transform_indices = @transform_0, window_bounds = array<i64: 256, 256>}, {transform_indices = @transform_1, window_bounds = array<i64: 256, 64>}, {transform_indices = @transform_2, window_bounds = array<i64: 1, 64>}, {transform_indices = @transform_3, window_bounds = array<i64: 1, 64>}, {transform_indices = @transform_4, window_bounds = array<i64: 256, 64>}]} {
    %c0_i32 = arith.constant 0 : i32
    %0 = arith.cmpi eq, %arg2, %c0_i32 : i32
    %1 = arith.extui %0 : i1 to i32
    %c0_i32_0 = arith.constant 0 : i32
    %2 = arith.cmpi ne, %1, %c0_i32_0 : i32
    scf.if %2 {
      %cst_10 = arith.constant 0.000000e+00 : f32
      %12 = vector.broadcast %cst_10 : f32 to vector<256x64xf32>
      %c0_11 = arith.constant 0 : index
      %c0_12 = arith.constant 0 : index
      %13 = vector.load %arg8[%c0_11, %c0_12] : memref<256x64xf32, #tpu.memory_space<vmem>>, vector<256x64xf32>
      tpu.vector_store %arg8[%c0_11, %c0_12], %12 {strides = array<i32>} : memref<256x64xf32, #tpu.memory_space<vmem>>, vector<256x64xf32>,
    } else {
    }
    %c0 = arith.constant 0 : index
    %c0_1 = arith.constant 0 : index
    %3 = vector.load %arg8[%c0, %c0_1] : memref<256x64xf32, #tpu.memory_space<vmem>>, vector<256x64xf32>
    %c0_2 = arith.constant 0 : index
    %c0_3 = arith.constant 0 : index
    %4 = vector.load %arg3[%c0_2, %c0_3] : memref<256x256xbf16, #tpu.memory_space<vmem>>, vector<256x256xbf16>
    %c0_4 = arith.constant 0 : index
    %c0_5 = arith.constant 0 : index
    %5 = vector.load %arg4[%c0_4, %c0_5] : memref<256x64xbf16, #tpu.memory_space<vmem>>, vector<256x64xbf16>
    %cst = arith.constant dense<0.000000e+00> : vector<256x64xf32>
    %6 = tpu.matmul %4, %5, %cst {dimension_numbers = #tpu.dot_dimension_numbers<[1], [0], [0], [1], [0, 0, 1, 1], [], []>} : vector<256x256xbf16>, vector<256x64xbf16>, vector<256x64xf32> -> vector<256x64xf32>
    %7 = arith.addf %3, %6 : vector<256x64xf32>
    %c0_6 = arith.constant 0 : index
    %c0_7 = arith.constant 0 : index
    %8 = vector.load %arg8[%c0_6, %c0_7] : memref<256x64xf32, #tpu.memory_space<vmem>>, vector<256x64xf32>
    tpu.vector_store %arg8[%c0_6, %c0_7], %7 {strides = array<i32>} : memref<256x64xf32, #tpu.memory_space<vmem>>, vector<256x64xf32>,
    %c0_i32_8 = arith.constant 0 : i32
    %9 = arith.cmpi eq, %arg2, %c0_i32_8 : i32
    %10 = arith.extui %9 : i1 to i32
    %c0_i32_9 = arith.constant 0 : i32
    %11 = arith.cmpi ne, %10, %c0_i32_9 : i32
    scf.if %11 {
      %c0_10 = arith.constant 0 : index
      %c0_11 = arith.constant 0 : index
      %12 = vector.load %arg8[%c0_10, %c0_11] : memref<256x64xf32, #tpu.memory_space<vmem>>, vector<256x64xf32>
      %c0_12 = arith.constant 0 : index
      %c0_13 = arith.constant 0 : index
      %13 = vector.load %arg5[%c0_12, %c0_13] : memref<1x64xf32, #tpu.memory_space<vmem>>, vector<1x64xf32>
      %14 = vector.broadcast %13 : vector<1x64xf32> to vector<256x64xf32>
      %15 = arith.mulf %12, %14 : vector<256x64xf32>
      %c0_14 = arith.constant 0 : index
      %c0_15 = arith.constant 0 : index
      %16 = vector.load %arg6[%c0_14, %c0_15] : memref<1x64xf32, #tpu.memory_space<vmem>>, vector<1x64xf32>
      %17 = vector.broadcast %16 : vector<1x64xf32> to vector<256x64xf32>
      %18 = arith.addf %15, %17 : vector<256x64xf32>
      %cst_16 = arith.constant 0.000000e+00 : f32
      %19 = vector.broadcast %cst_16 : f32 to vector<256x64xf32>
      %20 = arith.maximumf %18, %19 : vector<256x64xf32>
      %c0_17 = arith.constant 0 : index
      %c0_18 = arith.constant 0 : index
      %21 = vector.load %arg7[%c0_17, %c0_18] : memref<256x64xf32, #tpu.memory_space<vmem>>, vector<256x64xf32>
      tpu.vector_store %arg7[%c0_17, %c0_18], %20 {strides = array<i32>} : memref<256x64xf32, #tpu.memory_space<vmem>>, vector<256x64xf32>,
    } else {
    }
    return
  }
  func.func @transform_0(%arg0: i32, %arg1: i32, %arg2: i32) -> (i32, i32) {
    %c0_i32 = arith.constant 0 : i32
    return %arg0, %arg2 : i32, i32
  }
  func.func @transform_1(%arg0: i32, %arg1: i32, %arg2: i32) -> (i32, i32) {
    %c0_i32 = arith.constant 0 : i32
    return %arg2, %arg1 : i32, i32
  }
  func.func @transform_2(%arg0: i32, %arg1: i32, %arg2: i32) -> (i32, i32) {
    %c0_i32 = arith.constant 0 : i32
    %c0_i32_0 = arith.constant 0 : i32
    return %c0_i32, %arg1 : i32, i32
  }
  func.func @transform_3(%arg0: i32, %arg1: i32, %arg2: i32) -> (i32, i32) {
    %c0_i32 = arith.constant 0 : i32
    %c0_i32_0 = arith.constant 0 : i32
    return %c0_i32, %arg1 : i32, i32
  }
  func.func @transform_4(%arg0: i32, %arg1: i32, %arg2: i32) -> (i32, i32) {
    %c0_i32 = arith.constant 0 : i32
    return %arg0, %arg1 : i32, i32
  }
}

</mosaic_0001>

<bundles_post_ra>
// kernel: conv_bn.1
= control target key start
LH: loop header
LB: loop body
LE: loop exit
PB: predicated region body
PF: predicated region fallthrough
CT: control target
= control target key end

     0   :  { %9 = vsyncpa [#allocation4], 0  ;;  %s2105_s0 = inlined_call_operand.vmem [shape: bf16[2048,256], index: 0, kind: input, shape index: {}]   ;;  %s2106_s1 = inlined_call_operand.vmem [shape: bf16[256,64], index: 1, kind: input, shape index: {}]   ;;  %s2107_s2 = inlined_call_operand.vmem [shape: f32[1,64], index: 2, kind: input, shape index: {}]   ;;  %s2108_s3 = inlined_call_operand.vmem [shape: f32[1,64], index: 3, kind: input, shape index: {}]   ;;  %s2109_s4 = inlined_call_operand.hbm [shape: f32[2048,64], index: 4, kind: output, shape index: {}]  }
   0x1   :  { %11 = vsyncpa [#allocation4 + $0x1], 0  ;;  %s1686_s15 = smov 0   ;;  %s1688_s16 = smov 0  }
   0x2   :  { %s1690_s17 = smov 0   ;;  %s1692_s18 = smov 0  }
   0x3   :  { %s1694_s19 = smov 0   ;;  %s1696_s20 = smov 0  }
   0x4 LB: > { %s1243_s21 = sadd.s32 4294967295, %s1656_s20   ;;  %s1244_s22 = sadd.s32 4294967294, %s1656_s20   ;;  %s1656_s20 = sphi %s1696_s20, %s17_s20   ;;  %s1652_s19 = sphi %s1694_s19, %s2116_s19   ;;  %s1648_s18 = sphi %s1692_s18, %s2115_s18   ;;  %s1644_s17 = sphi %s1690_s17, %s2114_s17   ;;  %s1640_s16 = sphi %s1688_s16, %s2113_s16   ;;  %s1636_s15 = sphi %s1686_s15, %s2112_s15  }
   0x5   : > { %s36_s23 = sadd.s32 1, %s1652_s19  ;;  %s153_s24 = sadd.s32 1, %s1644_s17 }
   0x6   : > { %p38_p0 = scmp.ge.s32.totalorder %s36_s23, 8  ;;  %p163_p1 = scmp.ne.s32.totalorder %s1644_s17, %s1640_s16 }
   0x7   : > { %p164_p2 = scmp.eq.s32.totalorder %s1243_s21, 7  ;;  %p169_p3 = scmp.ne.s32.totalorder %s1640_s16, %s1636_s15 }
   0x8   : > { %s2118_s23 = smov (%p38_p0, %s36_s23), 0  ;;  %p170_p5 = scmp.eq.s32.totalorder %s1244_s22, 7 }
   0x9   : > { %p1726_p4 = por %p164_p2, %p163_p1  ;;  %s148_s26 = ssub.s32 %s1652_s19, %s2118_s23 }
   0xa   : > { %p1250_p6 = scmp.ge.s32.totalorder %s1656_s20, 1  ;;  %p151_p7 = scmp.eq.s32.totalorder %s148_s26, 0 }
   0xb   : > { %p1733_p8 = por %p170_p5, %p169_p3  ;;  %p227_p9 = scmp.lt.s32.totalorder %s1656_s20, 9 }
   0xc   : > { %s1739_s28 = scalar_select %p151_p7, %s1644_s17, %s153_s24  }
   0xd   : > { %p228_p10 = pnand %p1250_p6, %p227_p9 }
   0xe   : > { %s1252_s21 = sshll.u32 (!%p228_p10), %s1648_s18, 5  ;;  %s269_s10 = sand.u32 (!%p228_p10), 1, %s1640_s16  }
   0xf   : > { %231 = sbr.rel (%p228_p10) target bundleno = 328 (0x148), region = 36  ;;  %p274_p11 = scmp.lt.s32.totalorder (!%p228_p10), %s1252_s21, 255 }
  0x10   : > { %s1251_s13 = sshll.u32 (!%p228_p10), %s269_s10, 8  ;;  %s1501_s22 = sshll.u32 (!%p228_p10), %s1648_s18, 8 }
  0x11   : > { %s1909_s14 = scalar_lea.vmem (!%p228_p10), [#allocation3], %s1251_s13  ;;  %s1104_s18 = scalar_lea.sflag (!%p228_p10), [#allocation4], %s269_s10 }
  0x12   : > { %s1117_s29 = sshll.u32 (!%p228_p10), %s1909_s14, 4  ;;  %s1598_s9 = scalar_lea.hbm (!%p228_p10), %s2109_s4, 2048  ;;  %s1118_s29 = int_to_ptr.vmem [resolvable:$true] %s1117_s29 }
  0x14   : > { %v1492_v0 = vld [vmem:[%s2106_s1 + $0x38] sm:$0xff]  ;;  %v1491_v2 = vld [vmem:[%s2106_s1 + $0x30] sm:$0xff]  ;;  %v1490_v4 = vld [vmem:[%s2106_s1 + $0x28] sm:$0xff]  ;;  %s2120_s21 = smov (!%p274_p11, %s1252_s21), 255  ;;  %vm304_vm0 = vcmask 523264  }
  0x15   : > { %v1500_v1 = vld [vmem:[%s2106_s1 + $0x78] sm:$0xff]  ;;  %689 = vmatpush.bf16.msra.mxu0 %v1492_v0  ;;  %1502 = vmatpush.bf16.msra.mxu2 %v1492_v0  ;;  %v1499_v3 = vld [vmem:[%s2106_s1 + $0x70] sm:$0xff]  ;;  %v1498_v5 = vld [vmem:[%s2106_s1 + $0x68] sm:$0xff]  ;;  %s1452_s12 = sshll.u32 %s2120_s21, 3  ;;  %s1116_s21 = scalar_lea.hbm %s2109_s4, %s1501_s22 }
  0x16   : > { %778 = vmatpush.bf16.msra.mxu1 %v1500_v1  ;;  %1510 = vmatpush.bf16.msra.mxu3 %v1500_v1  ;;  %v1489_v6 = vld [vmem:[%s2106_s1 + $0x20] sm:$0xff]  ;;  %v1488_v8 = vld [vmem:[%s2106_s1 + $0x18] sm:$0xff]  ;;  %v1487_v10 = vld [vmem:[%s2106_s1 + $0x10] sm:$0xff]  ;;  %s1784_s26 = scalar_lea.vmem %s2105_s0, %s1452_s12  ;;  %s1119_s30 = sshll.u32 %s1116_s21, 4  ;;  %s1120_s30 = int_to_ptr.hbm [resolvable:$true] %s1119_s30 }
  0x17   : > { %v1497_v7 = vld [vmem:[%s2106_s1 + $0x60] sm:$0xff]  ;;  %v1496_v9 = vld [vmem:[%s2106_s1 + $0x58] sm:$0xff]  ;;  %v1495_v11 = vld [vmem:[%s2106_s1 + $0x50] sm:$0xff]  ;;  %s1592_s5 = sshra.s32 %s1120_s30, 4  ;;  %s1593_s5 = int_to_ptr.hbm [resolvable:$true] %s1592_s5 }
  0x18   : > { %v1486_v12 = vld [vmem:[%s2106_s1 + $0x8] sm:$0xff]  ;;  %v1485_v14 = vld [vmem:[%s2106_s1] sm:$0xff]  ;;  %v1265_v28 = vld [vmem:[%s1784_s26 + $0x10] sm:$0xf]  ;;  %s1594_s6 = scalar_lea.hbm %s1593_s5, 256  ;;  %p1599_p1 = scmp.lt.s32.totalorder %s1593_s5, %s2109_s4 }
  0x19   : > { %690 = vmatpush.bf16.msra.mxu0 %v1491_v2  ;;  %1503 = vmatpush.bf16.msra.mxu2 %v1491_v2  ;;  %v1494_v13 = vld [vmem:[%s2106_s1 + $0x48] sm:$0xff]  ;;  %v1493_v15 = vld [vmem:[%s2106_s1 + $0x40] sm:$0xff]  ;;  %v1456_v29 = vld [vmem:[%s1784_s26 + $0x14] sm:$0xf0]  ;;  %p1595_p12 = scmp.ne.s32.totalorder %s1593_s5, %s1594_s6  ;;  %p1600_p2 = scmp.lt.s32.totalorder %s1598_s9, %s1594_s6 }
  0x1a   : > { %779 = vmatpush.bf16.msra.mxu1 %v1499_v3  ;;  %1511 = vmatpush.bf16.msra.mxu3 %v1499_v3  ;;  %v1257_v16 = vld [vmem:[%s1784_s26] sm:$0xf]  ;;  %v1454_v17 = vld [vmem:[%s1784_s26 + $0x4] sm:$0xf0]  ;;  %v1453_v20 = vld [vmem:[%s1784_s26 + $0x4] sm:$0xf]  ;;  %v1266_v36 = vor.u32 %v1456_v29, %v1265_v28 }
  0x1b   : > { %v1321_v18 = vld [vmem:[%s1784_s26 + $0x80] sm:$0xf]  ;;  %v1470_v19 = vld [vmem:[%s1784_s26 + $0x84] sm:$0xf0]  ;;  %v1259_v21 = vld [vmem:[%s1784_s26 + $0x8] sm:$0xf0]  ;;  %v1258_v24 = vor.u32 %v1454_v17, %v1257_v16  ;;  %p1596_p13 = pnand %p1595_p12, %p1726_p4  ;;  %p1601_p3 = por %p1600_p2, %p1599_p1 }
  0x1c   : > { %v1469_v22 = vld [vmem:[%s1784_s26 + $0x84] sm:$0xf]  ;;  %v1323_v23 = vld [vmem:[%s1784_s26 + $0x88] sm:$0xf0]  ;;  %v1322_v25 = vor.u32 %v1470_v19, %v1321_v18  ;;  %v1262_v26 = vor.u32 %v1453_v20, %v1259_v21  ;;  %v1329_v30 = vld [vmem:[%s1784_s26 + $0x90] sm:$0xf] }
  0x1d   : > { %691 = vmatpush.bf16.msra.mxu0 %v1490_v4  ;;  %1504 = vmatpush.bf16.msra.mxu2 %v1490_v4  ;;  %v1326_v27 = vor.u32 %v1469_v22, %v1323_v23  ;;  %v1472_v31 = vld [vmem:[%s1784_s26 + $0x94] sm:$0xf0]  ;;  %v1455_v32 = vld [vmem:[%s1784_s26 + $0x14] sm:$0xf]  ;;  %v1267_v33 = vld [vmem:[%s1784_s26 + $0x18] sm:$0xf0]  ;;  %p1597_p0 = pneg %p1596_p13 }
  0x1e   : > { %780 = vmatpush.bf16.msra.mxu1 %v1498_v5  ;;  %1512 = vmatpush.bf16.msra.mxu3 %v1498_v5  ;;  %v1471_v34 = vld [vmem:[%s1784_s26 + $0x94] sm:$0xf]  ;;  %v1331_v35 = vld [vmem:[%s1784_s26 + $0x98] sm:$0xf0]  ;;  %v1330_v37 = vor.u32 %v1472_v31, %v1329_v30  ;;  %v1270_v38 = vor.u32 %v1455_v32, %v1267_v33  ;;  %v1273_v40 = vld [vmem:[%s1784_s26 + $0x20] sm:$0xf] }
  0x1f   : > { %v1334_v39 = vor.u32 %v1471_v34, %v1331_v35  ;;  %v1458_v41 = vld [vmem:[%s1784_s26 + $0x24] sm:$0xf0]  ;;  %v1337_v42 = vld [vmem:[%s1784_s26 + $0xa0] sm:$0xf]  ;;  %v1457_v44 = vld [vmem:[%s1784_s26 + $0x24] sm:$0xf]  ;;  %p1602_p5 = pnand %p1601_p3, %p1597_p0 }
  0x20   : > { %v1474_v43 = vld [vmem:[%s1784_s26 + $0xa4] sm:$0xf0]  ;;  %v1275_v45 = vld [vmem:[%s1784_s26 + $0x28] sm:$0xf0]  ;;  %v1473_v46 = vld [vmem:[%s1784_s26 + $0xa4] sm:$0xf]  ;;  %v1274_v48 = vor.u32 %v1458_v41, %v1273_v40 }
  0x21   : > { %692 = vmatpush.bf16.msra.mxu0 %v1489_v6  ;;  %1505 = vmatpush.bf16.msra.mxu2 %v1489_v6  ;;  %v1339_v47 = vld [vmem:[%s1784_s26 + $0xa8] sm:$0xf0]  ;;  %v1338_v49 = vor.u32 %v1474_v43, %v1337_v42  ;;  %v1278_v50 = vor.u32 %v1457_v44, %v1275_v45  ;;  %v1281_v52 = vld [vmem:[%s1784_s26 + $0x30] sm:$0xf]  ;;  %v1460_v53 = vld [vmem:[%s1784_s26 + $0x34] sm:$0xf0] }
  0x22   : > { %781 = vmatpush.bf16.msra.mxu1 %v1497_v7  ;;  %1513 = vmatpush.bf16.msra.mxu3 %v1497_v7  ;;  %v1342_v51 = vor.u32 %v1473_v46, %v1339_v47  ;;  %v1345_v54 = vld [vmem:[%s1784_s26 + $0xb0] sm:$0xf]  ;;  %v1476_v55 = vld [vmem:[%s1784_s26 + $0xb4] sm:$0xf0]  ;;  %v1459_v56 = vld [vmem:[%s1784_s26 + $0x34] sm:$0xf]  ;;  %v1282_v60 = vor.u32 %v1460_v53, %v1281_v52 }
  0x23   : > { %v1283_v57 = vld [vmem:[%s1784_s26 + $0x38] sm:$0xf0]  ;;  %v1475_v58 = vld [vmem:[%s1784_s26 + $0xb4] sm:$0xf]  ;;  %v1346_v61 = vor.u32 %v1476_v55, %v1345_v54  ;;  %v1289_v0 = vld [vmem:[%s1784_s26 + $0x40] sm:$0xf] }
  0x24   : > { %v1347_v59 = vld [vmem:[%s1784_s26 + $0xb8] sm:$0xf0]  ;;  %v1286_v62 = vor.u32 %v1459_v56, %v1283_v57  ;;  %v1462_v1 = vld [vmem:[%s1784_s26 + $0x44] sm:$0xf0]  ;;  %v1353_v2 = vld [vmem:[%s1784_s26 + $0xc0] sm:$0xf] }
  0x25   : > { %693 = vmatpush.bf16.msra.mxu0 %v1488_v8  ;;  %1506 = vmatpush.bf16.msra.mxu2 %v1488_v8  ;;  %v1350_v63 = vor.u32 %v1475_v58, %v1347_v59  ;;  %v1478_v3 = vld [vmem:[%s1784_s26 + $0xc4] sm:$0xf0]  ;;  %v1461_v4 = vld [vmem:[%s1784_s26 + $0x44] sm:$0xf]  ;;  %v1291_v5 = vld [vmem:[%s1784_s26 + $0x48] sm:$0xf0]  ;;  %v1290_v8 = vor.u32 %v1462_v1, %v1289_v0 }
  0x26   : > { %782 = vmatpush.bf16.msra.mxu1 %v1496_v9  ;;  %1514 = vmatpush.bf16.msra.mxu3 %v1496_v9  ;;  %v1477_v6 = vld [vmem:[%s1784_s26 + $0xc4] sm:$0xf]  ;;  %v1355_v7 = vld [vmem:[%s1784_s26 + $0xc8] sm:$0xf0]  ;;  %v1354_v9 = vor.u32 %v1478_v3, %v1353_v2  ;;  %v1463_v16 = vld [vmem:[%s1784_s26 + $0x54] sm:$0xf] }
  0x27   : > { %v1299_v17 = vld [vmem:[%s1784_s26 + $0x58] sm:$0xf0]  ;;  %v1479_v18 = vld [vmem:[%s1784_s26 + $0xd4] sm:$0xf]  ;;  %v1465_v28 = vld [vmem:[%s1784_s26 + $0x64] sm:$0xf] }
  0x28   : > { %v1363_v19 = vld [vmem:[%s1784_s26 + $0xd8] sm:$0xf0]  ;;  %v1302_v22 = vor.u32 %v1463_v16, %v1299_v17  ;;  %v1307_v29 = vld [vmem:[%s1784_s26 + $0x68] sm:$0xf0]  ;;  %v1481_v30 = vld [vmem:[%s1784_s26 + $0xe4] sm:$0xf] }
  0x29   : > { %694 = vmatpush.bf16.msra.mxu0 %v1487_v10  ;;  %1507 = vmatpush.bf16.msra.mxu2 %v1487_v10  ;;  %v1294_v10 = vor.u32 %v1461_v4, %v1291_v5  ;;  %v1366_v23 = vor.u32 %v1479_v18, %v1363_v19  ;;  %v1371_v31 = vld [vmem:[%s1784_s26 + $0xe8] sm:$0xf0]  ;;  %v1310_v34 = vor.u32 %v1465_v28, %v1307_v29  ;;  %v1484_v40 = vld [vmem:[%s1784_s26 + $0xf4] sm:$0xf0]  ;;  %v1467_v41 = vld [vmem:[%s1784_s26 + $0x74] sm:$0xf] }
  0x2a   : > { %783 = vmatpush.bf16.msra.mxu1 %v1495_v11  ;;  %1515 = vmatpush.bf16.msra.mxu3 %v1495_v11  ;;  %v1358_v11 = vor.u32 %v1477_v6, %v1355_v7  ;;  %v1374_v35 = vor.u32 %v1481_v30, %v1371_v31  ;;  %v1315_v42 = vld [vmem:[%s1784_s26 + $0x78] sm:$0xf0]  ;;  %v1483_v43 = vld [vmem:[%s1784_s26 + $0xf4] sm:$0xf]  ;;  %v1901_v0 = vld [vmem:[%s2108_s3] ss:$0 sm:$0xff] }
  0x2b   : > { %v1379_v44 = vld [vmem:[%s1784_s26 + $0xf8] sm:$0xf0]  ;;  %v1318_v47 = vor.u32 %v1467_v41, %v1315_v42 }
  0x2d   : > { %695 = vmatpush.bf16.msra.mxu0 %v1486_v12  ;;  %1508 = vmatpush.bf16.msra.mxu2 %v1486_v12  ;;  %v1297_v12 = vld [vmem:[%s1784_s26 + $0x50] sm:$0xf] }
  0x2e   : > { %784 = vmatpush.bf16.msra.mxu1 %v1494_v13  ;;  %1516 = vmatpush.bf16.msra.mxu3 %v1494_v13  ;;  %v1464_v13 = vld [vmem:[%s1784_s26 + $0x54] sm:$0xf0] }
  0x2f   : > { %v1298_v20 = vor.u32 %v1464_v13, %v1297_v12 }
  0x31   : > { %696 = vmatpush.bf16.msra.mxu0 %v1485_v14  ;;  %1509 = vmatpush.bf16.msra.mxu2 %v1485_v14  ;;  %v1361_v14 = vld [vmem:[%s1784_s26 + $0xd0] sm:$0xf] }
  0x32   : > { %785 = vmatpush.bf16.msra.mxu1 %v1493_v15  ;;  %1517 = vmatpush.bf16.msra.mxu3 %v1493_v15  ;;  %v1480_v15 = vld [vmem:[%s1784_s26 + $0xd4] sm:$0xf0] }
  0x33   : > { %v1362_v21 = vor.u32 %v1480_v15, %v1361_v14 }
  0x34   : > { %697 = vmatmul.bf16.vlgmr.msra.gmra.mxu0 %v1258_v24  ;;  %737 = vmatmul.bf16.vlgmr.msra.gmra.mxu2 %v1322_v25  ;;  %v1305_v24 = vld [vmem:[%s1784_s26 + $0x60] sm:$0xf]  ;;  %v1466_v25 = vld [vmem:[%s1784_s26 + $0x64] sm:$0xf0] }
  0x35   : > { %786 = vmatmul.bf16.vlgmr.msra.gmra.mxu1 %v1262_v26  ;;  %826 = vmatmul.bf16.vlgmr.msra.gmra.mxu3 %v1326_v27  ;;  %v1369_v26 = vld [vmem:[%s1784_s26 + $0xe0] sm:$0xf]  ;;  %v1482_v27 = vld [vmem:[%s1784_s26 + $0xe4] sm:$0xf0]  ;;  %v1306_v32 = vor.u32 %v1466_v25, %v1305_v24 }
  0x36   : > { %v1370_v33 = vor.u32 %v1482_v27, %v1369_v26 }
  0x44   : > { %702 = vmatmul.bf16.gmra.mxu0 %v1266_v36  ;;  %742 = vmatmul.bf16.gmra.mxu2 %v1330_v37  ;;  %v1658_v36 = vmov 0.0   ;;  %v1313_v37 = vld [vmem:[%s1784_s26 + $0x70] sm:$0xf] }
  0x45   : > { %791 = vmatmul.bf16.gmra.mxu1 %v1270_v38  ;;  %831 = vmatmul.bf16.gmra.mxu3 %v1334_v39  ;;  %305 = vst.msk [vmem:[#allocation2] sm:$0xff] %vm304_vm0, %v1658_v36  ;;  %v1468_v38 = vld [vmem:[%s1784_s26 + $0x74] sm:$0xf0]  ;;  %v1377_v39 = vld [vmem:[%s1784_s26 + $0xf0] sm:$0xf] }
  0x46   : > { %306 = vst.msk [vmem:[#allocation2 + $0x8] sm:$0xff] %vm304_vm0, %v1658_v36  ;;  %v1314_v45 = vor.u32 %v1468_v38, %v1313_v37  ;;  %v1378_v46 = vor.u32 %v1484_v40, %v1377_v39 }
  0x47   : > { %307 = vst.msk [vmem:[#allocation2 + $0x10] sm:$0xff] %vm304_vm0, %v1658_v36 }
  0x48   : > { %308 = vst.msk [vmem:[#allocation2 + $0x18] sm:$0xff] %vm304_vm0, %v1658_v36 }
  0x49   : > { %309 = vst.msk [vmem:[#allocation2 + $0x20] sm:$0xff] %vm304_vm0, %v1658_v36 }
  0x4a   : > { %310 = vst.msk [vmem:[#allocation2 + $0x28] sm:$0xff] %vm304_vm0, %v1658_v36 }
  0x4b   : > { %311 = vst.msk [vmem:[#allocation2 + $0x30] sm:$0xff] %vm304_vm0, %v1658_v36 }
  0x4c   : > { %312 = vst.msk [vmem:[#allocation2 + $0x38] sm:$0xff] %vm304_vm0, %v1658_v36 }
  0x4d   : > { %313 = vst.msk [vmem:[#allocation2 + $0x40] sm:$0xff] %vm304_vm0, %v1658_v36  ;;  %v338_v59 = vld [vmem:[#allocation2 + $0x8] sm:$0xff] }
  0x4e   : > { %314 = vst.msk [vmem:[#allocation2 + $0x48] sm:$0xff] %vm304_vm0, %v1658_v36 }
  0x4f   : > { %315 = vst.msk [vmem:[#allocation2 + $0x50] sm:$0xff] %vm304_vm0, %v1658_v36  ;;  %v340_v28 = vld [vmem:[#allocation2 + $0x18] sm:$0xff] }
  0x50   : > { %316 = vst.msk [vmem:[#allocation2 + $0x58] sm:$0xff] %vm304_vm0, %v1658_v36 }
  0x51   : > { %317 = vst.msk [vmem:[#allocation2 + $0x60] sm:$0xff] %vm304_vm0, %v1658_v36 }
  0x52   : > { %318 = vst.msk [vmem:[#allocation2 + $0x68] sm:$0xff] %vm304_vm0, %v1658_v36 }
  0x53   : > { %319 = vst.msk [vmem:[#allocation2 + $0x70] sm:$0xff] %vm304_vm0, %v1658_v36 }
  0x54   : > { %707 = vmatmul.bf16.gmra.mxu0 %v1274_v48  ;;  %747 = vmatmul.bf16.gmra.mxu2 %v1338_v49  ;;  %v1382_v48 = vor.u32 %v1483_v43, %v1379_v44  ;;  %320 = vst.msk [vmem:[#allocation2 + $0x78] sm:$0xff] %vm304_vm0, %v1658_v36 }
  0x55   : > { %796 = vmatmul.bf16.gmra.mxu1 %v1278_v50  ;;  %836 = vmatmul.bf16.gmra.mxu3 %v1342_v51  ;;  %321 = vst.msk [vmem:[#allocation2 + $0x80] sm:$0xff] %vm304_vm0, %v1658_v36  ;;  %v337_v50 = vld [vmem:[#allocation2] sm:$0xff] }
  0x56   : > { %322 = vst.msk [vmem:[#allocation2 + $0x88] sm:$0xff] %vm304_vm0, %v1658_v36 }
  0x57   : > { %323 = vst.msk [vmem:[#allocation2 + $0x90] sm:$0xff] %vm304_vm0, %v1658_v36 }
  0x58   : > { %324 = vst.msk [vmem:[#allocation2 + $0x98] sm:$0xff] %vm304_vm0, %v1658_v36 }
  0x59   : > { %325 = vst.msk [vmem:[#allocation2 + $0xa0] sm:$0xff] %vm304_vm0, %v1658_v36 }
  0x5a   : > { %326 = vst.msk [vmem:[#allocation2 + $0xa8] sm:$0xff] %vm304_vm0, %v1658_v36 }
  0x5b   : > { %327 = vst.msk [vmem:[#allocation2 + $0xb0] sm:$0xff] %vm304_vm0, %v1658_v36 }
  0x5c   : > { %328 = vst.msk [vmem:[#allocation2 + $0xb8] sm:$0xff] %vm304_vm0, %v1658_v36  ;;  %v353_v55 = vld [vmem:[#allocation2 + $0x80] sm:$0xff] }
  0x5d   : > { %329 = vst.msk [vmem:[#allocation2 + $0xc0] sm:$0xff] %vm304_vm0, %v1658_v36  ;;  %v354_v5 = vld [vmem:[#allocation2 + $0x88] sm:$0xff] }
  0x5e   : > { %330 = vst.msk [vmem:[#allocation2 + $0xc8] sm:$0xff] %vm304_vm0, %v1658_v36 }
  0x5f   : > { %331 = vst.msk [vmem:[#allocation2 + $0xd0] sm:$0xff] %vm304_vm0, %v1658_v36  ;;  %v356_v40 = vld [vmem:[#allocation2 + $0x98] sm:$0xff] }
  0x60   : > { %332 = vst.msk [vmem:[#allocation2 + $0xd8] sm:$0xff] %vm304_vm0, %v1658_v36 }
  0x61   : > { %333 = vst.msk [vmem:[#allocation2 + $0xe0] sm:$0xff] %vm304_vm0, %v1658_v36 }
  0x62   : > { %334 = vst.msk [vmem:[#allocation2 + $0xe8] sm:$0xff] %vm304_vm0, %v1658_v36 }
  0x63   : > { %335 = vst.msk [vmem:[#allocation2 + $0xf0] sm:$0xff] %vm304_vm0, %v1658_v36 }
  0x64   : > { %712 = vmatmul.bf16.gmra.mxu0 %v1282_v60  ;;  %752 = vmatmul.bf16.gmra.mxu2 %v1346_v61  ;;  %336 = vst.msk [vmem:[#allocation2 + $0xf8] sm:$0xff] %vm304_vm0, %v1658_v36  ;;  %v1895_v61 = vld [vmem:[%s2107_s2] ss:$0 sm:$0xff] }
  0x65   : > { %801 = vmatmul.bf16.gmra.mxu1 %v1286_v62  ;;  %841 = vmatmul.bf16.gmra.mxu3 %v1350_v63 }
  0x74   : > { %717 = vmatmul.bf16.gmra.mxu0 %v1290_v8  ;;  %757 = vmatmul.bf16.gmra.mxu2 %v1354_v9 }
  0x75   : > { %806 = vmatmul.bf16.gmra.mxu1 %v1294_v10  ;;  %846 = vmatmul.bf16.gmra.mxu3 %v1358_v11  ;;  %v339_v10 = vld [vmem:[#allocation2 + $0x10] sm:$0xff] }
  0x84   : > { %722 = vmatmul.bf16.gmra.mxu0 %v1298_v20  ;;  %762 = vmatmul.bf16.gmra.mxu2 %v1362_v21 }
  0x85   : > { %811 = vmatmul.bf16.gmra.mxu1 %v1302_v22  ;;  %851 = vmatmul.bf16.gmra.mxu3 %v1366_v23  ;;  %v355_v22 = vld [vmem:[#allocation2 + $0x90] sm:$0xff] }
  0x94   : > { %727 = vmatmul.bf16.gmra.mxu0 %v1306_v32  ;;  %767 = vmatmul.bf16.gmra.mxu2 %v1370_v33 }
  0x95   : > { %816 = vmatmul.bf16.gmra.mxu1 %v1310_v34  ;;  %856 = vmatmul.bf16.gmra.mxu3 %v1374_v35 }
  0xa4   : > { %732 = vmatmul.bf16.gmra.mxu0 %v1314_v45  ;;  %772 = vmatmul.bf16.gmra.mxu2 %v1378_v46  ;;  %v341_v46 = vld [vmem:[#allocation2 + $0x20] sm:$0xff] }
  0xa5   : > { %821 = vmatmul.bf16.gmra.mxu1 %v1318_v47  ;;  %861 = vmatmul.bf16.gmra.mxu3 %v1382_v48 }
  0xb1   : > { %v698_v49 = vpop.f32.mrf.mxu0 }
  0xb2   : > { %v787_v51 = vpop.f32.mrf.mxu1 }
  0xb3   : > { %v788_v52 = vadd.f32 %v787_v51, %v698_v49 }
  0xb5   : > { %v867_v53 = vadd.f32 %v788_v52, %v337_v50 }
  0xb7   : > { %900 = vst.msk [vmem:[#allocation2] sm:$0xff] %vm304_vm0, %v867_v53  ;;  %v738_v54 = vpop.f32.mrf.mxu2 }
  0xb8   : > { %v827_v56 = vpop.f32.mrf.mxu3 }
  0xb9   : > { %v828_v57 = vadd.f32 %v827_v56, %v738_v54  ;;  %v700_v58 = vpop.f32.mrf.mxu0 }
  0xba   : > { %v789_v60 = vpop.f32.mrf.mxu1 }
  0xbb   : > { %v883_v62 = vadd.f32 %v828_v57, %v353_v55  ;;  %v790_v63 = vadd.f32 %v789_v60, %v700_v58  ;;  %v357_v58 = vld [vmem:[#allocation2 + $0xa0] sm:$0xff] }
  0xbd   : > { %916 = vst.msk [vmem:[#allocation2 + $0x80] sm:$0xff] %vm304_vm0, %v883_v62  ;;  %v868_v1 = vadd.f32 %v790_v63, %v338_v59 }
  0xbe   : > { %v935_v2 = vld [vmem:[#allocation2] sm:$0xff] }
  0xbf   : > { %v971_v3 = vmul.f32 %v1895_v61, %v935_v2  ;;  %901 = vst.msk [vmem:[#allocation2 + $0x8] sm:$0xff] %vm304_vm0, %v868_v1  ;;  %v740_v4 = vpop.f32.mrf.mxu2  ;;  %v342_v2 = vld [vmem:[#allocation2 + $0x28] sm:$0xff] }
  0xc0   : > { %v829_v6 = vpop.f32.mrf.mxu3 }
  0xc1   : > { %v1007_v7 = vadd.f32 %v1901_v0, %v971_v3  ;;  %v830_v8 = vadd.f32 %v829_v6, %v740_v4  ;;  %v703_v9 = vpop.f32.mrf.mxu0 }
  0xc2   : > { %v792_v11 = vpop.f32.mrf.mxu1 }
  0xc3   : > { %v1039_v12 = vmax.f32 %v1007_v7, 0.0  ;;  %v884_v13 = vadd.f32 %v830_v8, %v354_v5  ;;  %v793_v14 = vadd.f32 %v792_v11, %v703_v9 }
  0xc4   : > { %v951_v15 = vld [vmem:[#allocation2 + $0x80] sm:$0xff] }
  0xc5   : > { %1071 = vst.msk [vmem:[%s1909_s14] sm:$0xff] %vm304_vm0, %v1039_v12  ;;  %v987_v16 = vmul.f32 %v1895_v61, %v951_v15  ;;  %v869_v17 = vadd.f32 %v793_v14, %v339_v10  ;;  %v358_v14 = vld [vmem:[#allocation2 + $0xa8] sm:$0xff] }
  0xc6   : > { %v936_v18 = vld [vmem:[#allocation2 + $0x8] sm:$0xff]  ;;  %917 = vst.msk [vmem:[#allocation2 + $0x88] sm:$0xff] %vm304_vm0, %v884_v13 }
  0xc7   : > { %v1023_v19 = vadd.f32 %v1901_v0, %v987_v16  ;;  %v972_v20 = vmul.f32 %v1895_v61, %v936_v18  ;;  %902 = vst.msk [vmem:[#allocation2 + $0x10] sm:$0xff] %vm304_vm0, %v869_v17  ;;  %v743_v21 = vpop.f32.mrf.mxu2 }
  0xc8   : > { %v832_v23 = vpop.f32.mrf.mxu3 }
  0xc9   : > { %v1055_v24 = vmax.f32 %v1023_v19, 0.0  ;;  %v1008_v25 = vadd.f32 %v1901_v0, %v972_v20  ;;  %v833_v26 = vadd.f32 %v832_v23, %v743_v21  ;;  %v705_v27 = vpop.f32.mrf.mxu0  ;;  %v343_v20 = vld [vmem:[#allocation2 + $0x30] sm:$0xff] }
  0xca   : > { %v794_v29 = vpop.f32.mrf.mxu1 }
  0xcb   : > { %1087 = vst.msk [vmem:[%s1909_s14 + $0x80] sm:$0xff] %vm304_vm0, %v1055_v24  ;;  %v1040_v30 = vmax.f32 %v1008_v25, 0.0  ;;  %v885_v31 = vadd.f32 %v833_v26, %v355_v22  ;;  %v795_v32 = vadd.f32 %v794_v29, %v705_v27 }
  0xcd   : > { %1072 = vst.msk [vmem:[%s1909_s14 + $0x8] sm:$0xff] %vm304_vm0, %v1040_v30  ;;  %v952_v33 = vld [vmem:[#allocation2 + $0x88] sm:$0xff]  ;;  %v870_v34 = vadd.f32 %v795_v32, %v340_v28  ;;  %v359_v32 = vld [vmem:[#allocation2 + $0xb0] sm:$0xff] }
  0xce   : > { %v988_v35 = vmul.f32 %v1895_v61, %v952_v33  ;;  %v937_v36 = vld [vmem:[#allocation2 + $0x10] sm:$0xff]  ;;  %918 = vst.msk [vmem:[#allocation2 + $0x90] sm:$0xff] %vm304_vm0, %v885_v31 }
  0xcf   : > { %v973_v37 = vmul.f32 %v1895_v61, %v937_v36  ;;  %903 = vst.msk [vmem:[#allocation2 + $0x18] sm:$0xff] %vm304_vm0, %v870_v34  ;;  %v745_v38 = vpop.f32.mrf.mxu2 }
  0xd0   : > { %v1024_v39 = vadd.f32 %v1901_v0, %v988_v35  ;;  %v834_v41 = vpop.f32.mrf.mxu3 }
  0xd1   : > { %v1009_v42 = vadd.f32 %v1901_v0, %v973_v37  ;;  %v835_v43 = vadd.f32 %v834_v41, %v745_v38  ;;  %v708_v44 = vpop.f32.mrf.mxu0  ;;  %v344_v38 = vld [vmem:[#allocation2 + $0x38] sm:$0xff] }
  0xd2   : > { %v1056_v45 = vmax.f32 %v1024_v39, 0.0  ;;  %v797_v47 = vpop.f32.mrf.mxu1 }
  0xd3   : > { %v1041_v48 = vmax.f32 %v1009_v42, 0.0  ;;  %v886_v49 = vadd.f32 %v835_v43, %v356_v40  ;;  %v798_v50 = vadd.f32 %v797_v47, %v708_v44 }
  0xd4   : > { %1088 = vst.msk [vmem:[%s1909_s14 + $0x88] sm:$0xff] %vm304_vm0, %v1056_v45 }
  0xd5   : > { %1073 = vst.msk [vmem:[%s1909_s14 + $0x10] sm:$0xff] %vm304_vm0, %v1041_v48  ;;  %v953_v51 = vld [vmem:[#allocation2 + $0x90] sm:$0xff]  ;;  %v871_v52 = vadd.f32 %v798_v50, %v341_v46  ;;  %v360_v50 = vld [vmem:[#allocation2 + $0xb8] sm:$0xff] }
  0xd6   : > { %v989_v53 = vmul.f32 %v1895_v61, %v953_v51  ;;  %v938_v54 = vld [vmem:[#allocation2 + $0x18] sm:$0xff]  ;;  %919 = vst.msk [vmem:[#allocation2 + $0x98] sm:$0xff] %vm304_vm0, %v886_v49 }
  0xd7   : > { %v974_v55 = vmul.f32 %v1895_v61, %v938_v54  ;;  %904 = vst.msk [vmem:[#allocation2 + $0x20] sm:$0xff] %vm304_vm0, %v871_v52  ;;  %v748_v56 = vpop.f32.mrf.mxu2 }
  0xd8   : > { %v1025_v57 = vadd.f32 %v1901_v0, %v989_v53  ;;  %v837_v59 = vpop.f32.mrf.mxu3 }
  0xd9   : > { %v1010_v60 = vadd.f32 %v1901_v0, %v974_v55  ;;  %v838_v62 = vadd.f32 %v837_v59, %v748_v56  ;;  %v710_v63 = vpop.f32.mrf.mxu0  ;;  %v345_v56 = vld [vmem:[#allocation2 + $0x40] sm:$0xff] }
  0xda   : > { %v1057_v1 = vmax.f32 %v1025_v57, 0.0  ;;  %v799_v3 = vpop.f32.mrf.mxu1 }
  0xdb   : > { %v1042_v4 = vmax.f32 %v1010_v60, 0.0  ;;  %v887_v5 = vadd.f32 %v838_v62, %v357_v58  ;;  %v800_v6 = vadd.f32 %v799_v3, %v710_v63 }
  0xdc   : > { %1089 = vst.msk [vmem:[%s1909_s14 + $0x90] sm:$0xff] %vm304_vm0, %v1057_v1 }
  0xdd   : > { %1074 = vst.msk [vmem:[%s1909_s14 + $0x18] sm:$0xff] %vm304_vm0, %v1042_v4  ;;  %v954_v7 = vld [vmem:[#allocation2 + $0x98] sm:$0xff]  ;;  %v872_v8 = vadd.f32 %v800_v6, %v342_v2  ;;  %v361_v6 = vld [vmem:[#allocation2 + $0xc0] sm:$0xff] }
  0xde   : > { %v990_v9 = vmul.f32 %v1895_v61, %v954_v7  ;;  %v939_v10 = vld [vmem:[#allocation2 + $0x20] sm:$0xff]  ;;  %920 = vst.msk [vmem:[#allocation2 + $0xa0] sm:$0xff] %vm304_vm0, %v887_v5 }
  0xdf   : > { %v975_v11 = vmul.f32 %v1895_v61, %v939_v10  ;;  %905 = vst.msk [vmem:[#allocation2 + $0x28] sm:$0xff] %vm304_vm0, %v872_v8  ;;  %v750_v12 = vpop.f32.mrf.mxu2 }
  0xe0   : > { %v1026_v13 = vadd.f32 %v1901_v0, %v990_v9  ;;  %v839_v15 = vpop.f32.mrf.mxu3 }
  0xe1   : > { %v1011_v16 = vadd.f32 %v1901_v0, %v975_v11  ;;  %v840_v17 = vadd.f32 %v839_v15, %v750_v12  ;;  %v713_v18 = vpop.f32.mrf.mxu0  ;;  %v346_v12 = vld [vmem:[#allocation2 + $0x48] sm:$0xff] }
  0xe2   : > { %v1058_v19 = vmax.f32 %v1026_v13, 0.0  ;;  %v802_v21 = vpop.f32.mrf.mxu1 }
  0xe3   : > { %v1043_v22 = vmax.f32 %v1011_v16, 0.0  ;;  %v888_v23 = vadd.f32 %v840_v17, %v358_v14  ;;  %v803_v24 = vadd.f32 %v802_v21, %v713_v18 }
  0xe4   : > { %1090 = vst.msk [vmem:[%s1909_s14 + $0x98] sm:$0xff] %vm304_vm0, %v1058_v19 }
  0xe5   : > { %1075 = vst.msk [vmem:[%s1909_s14 + $0x20] sm:$0xff] %vm304_vm0, %v1043_v22  ;;  %v955_v25 = vld [vmem:[#allocation2 + $0xa0] sm:$0xff]  ;;  %v873_v26 = vadd.f32 %v803_v24, %v343_v20  ;;  %v362_v24 = vld [vmem:[#allocation2 + $0xc8] sm:$0xff] }
  0xe6   : > { %v991_v27 = vmul.f32 %v1895_v61, %v955_v25  ;;  %v940_v28 = vld [vmem:[#allocation2 + $0x28] sm:$0xff]  ;;  %921 = vst.msk [vmem:[#allocation2 + $0xa8] sm:$0xff] %vm304_vm0, %v888_v23 }
  0xe7   : > { %v976_v29 = vmul.f32 %v1895_v61, %v940_v28  ;;  %906 = vst.msk [vmem:[#allocation2 + $0x30] sm:$0xff] %vm304_vm0, %v873_v26  ;;  %v753_v30 = vpop.f32.mrf.mxu2 }
  0xe8   : > { %v1027_v31 = vadd.f32 %v1901_v0, %v991_v27  ;;  %v842_v33 = vpop.f32.mrf.mxu3 }
  0xe9   : > { %v1012_v34 = vadd.f32 %v1901_v0, %v976_v29  ;;  %v843_v35 = vadd.f32 %v842_v33, %v753_v30  ;;  %v715_v36 = vpop.f32.mrf.mxu0  ;;  %v347_v30 = vld [vmem:[#allocation2 + $0x50] sm:$0xff] }
  0xea   : > { %v1059_v37 = vmax.f32 %v1027_v31, 0.0  ;;  %v804_v39 = vpop.f32.mrf.mxu1 }
  0xeb   : > { %v1044_v40 = vmax.f32 %v1012_v34, 0.0  ;;  %v889_v41 = vadd.f32 %v843_v35, %v359_v32  ;;  %v805_v42 = vadd.f32 %v804_v39, %v715_v36 }
  0xec   : > { %1091 = vst.msk [vmem:[%s1909_s14 + $0xa0] sm:$0xff] %vm304_vm0, %v1059_v37 }
  0xed   : > { %1076 = vst.msk [vmem:[%s1909_s14 + $0x28] sm:$0xff] %vm304_vm0, %v1044_v40  ;;  %v956_v43 = vld [vmem:[#allocation2 + $0xa8] sm:$0xff]  ;;  %v874_v44 = vadd.f32 %v805_v42, %v344_v38  ;;  %v363_v42 = vld [vmem:[#allocation2 + $0xd0] sm:$0xff] }
  0xee   : > { %v992_v45 = vmul.f32 %v1895_v61, %v956_v43  ;;  %v941_v46 = vld [vmem:[#allocation2 + $0x30] sm:$0xff]  ;;  %922 = vst.msk [vmem:[#allocation2 + $0xb0] sm:$0xff] %vm304_vm0, %v889_v41 }
  0xef   : > { %v977_v47 = vmul.f32 %v1895_v61, %v941_v46  ;;  %907 = vst.msk [vmem:[#allocation2 + $0x38] sm:$0xff] %vm304_vm0, %v874_v44  ;;  %v755_v48 = vpop.f32.mrf.mxu2 }
  0xf0   : > { %v1028_v49 = vadd.f32 %v1901_v0, %v992_v45  ;;  %v844_v51 = vpop.f32.mrf.mxu3 }
  0xf1   : > { %v1013_v52 = vadd.f32 %v1901_v0, %v977_v47  ;;  %v845_v53 = vadd.f32 %v844_v51, %v755_v48  ;;  %v718_v54 = vpop.f32.mrf.mxu0  ;;  %v348_v48 = vld [vmem:[#allocation2 + $0x58] sm:$0xff] }
  0xf2   : > { %v1060_v55 = vmax.f32 %v1028_v49, 0.0  ;;  %v807_v57 = vpop.f32.mrf.mxu1 }
  0xf3   : > { %v1045_v58 = vmax.f32 %v1013_v52, 0.0  ;;  %v890_v59 = vadd.f32 %v845_v53, %v360_v50  ;;  %v808_v60 = vadd.f32 %v807_v57, %v718_v54 }
  0xf4   : > { %1092 = vst.msk [vmem:[%s1909_s14 + $0xa8] sm:$0xff] %vm304_vm0, %v1060_v55 }
  0xf5   : > { %1077 = vst.msk [vmem:[%s1909_s14 + $0x30] sm:$0xff] %vm304_vm0, %v1045_v58  ;;  %v957_v62 = vld [vmem:[#allocation2 + $0xb0] sm:$0xff]  ;;  %v875_v63 = vadd.f32 %v808_v60, %v345_v56  ;;  %v364_v60 = vld [vmem:[#allocation2 + $0xd8] sm:$0xff] }
  0xf6   : > { %v993_v1 = vmul.f32 %v1895_v61, %v957_v62  ;;  %v942_v2 = vld [vmem:[#allocation2 + $0x38] sm:$0xff]  ;;  %923 = vst.msk [vmem:[#allocation2 + $0xb8] sm:$0xff] %vm304_vm0, %v890_v59 }
  0xf7   : > { %v978_v3 = vmul.f32 %v1895_v61, %v942_v2  ;;  %908 = vst.msk [vmem:[#allocation2 + $0x40] sm:$0xff] %vm304_vm0, %v875_v63  ;;  %v758_v4 = vpop.f32.mrf.mxu2 }
  0xf8   : > { %v1029_v5 = vadd.f32 %v1901_v0, %v993_v1  ;;  %v847_v7 = vpop.f32.mrf.mxu3 }
  0xf9   : > { %v1014_v8 = vadd.f32 %v1901_v0, %v978_v3  ;;  %v848_v9 = vadd.f32 %v847_v7, %v758_v4  ;;  %v720_v10 = vpop.f32.mrf.mxu0  ;;  %v349_v4 = vld [vmem:[#allocation2 + $0x60] sm:$0xff] }
  0xfa   : > { %v1061_v11 = vmax.f32 %v1029_v5, 0.0  ;;  %v809_v13 = vpop.f32.mrf.mxu1 }
  0xfb   : > { %v1046_v14 = vmax.f32 %v1014_v8, 0.0  ;;  %v891_v15 = vadd.f32 %v848_v9, %v361_v6  ;;  %v810_v16 = vadd.f32 %v809_v13, %v720_v10 }
  0xfc   : > { %1093 = vst.msk [vmem:[%s1909_s14 + $0xb0] sm:$0xff] %vm304_vm0, %v1061_v11 }
  0xfd   : > { %1078 = vst.msk [vmem:[%s1909_s14 + $0x38] sm:$0xff] %vm304_vm0, %v1046_v14  ;;  %v958_v17 = vld [vmem:[#allocation2 + $0xb8] sm:$0xff]  ;;  %v876_v18 = vadd.f32 %v810_v16, %v346_v12  ;;  %v365_v16 = vld [vmem:[#allocation2 + $0xe0] sm:$0xff] }
  0xfe   : > { %v994_v19 = vmul.f32 %v1895_v61, %v958_v17  ;;  %v943_v20 = vld [vmem:[#allocation2 + $0x40] sm:$0xff]  ;;  %924 = vst.msk [vmem:[#allocation2 + $0xc0] sm:$0xff] %vm304_vm0, %v891_v15 }
  0xff   : > { %v979_v21 = vmul.f32 %v1895_v61, %v943_v20  ;;  %909 = vst.msk [vmem:[#allocation2 + $0x48] sm:$0xff] %vm304_vm0, %v876_v18  ;;  %v760_v22 = vpop.f32.mrf.mxu2 }
 0x100   : > { %v1030_v23 = vadd.f32 %v1901_v0, %v994_v19  ;;  %v849_v25 = vpop.f32.mrf.mxu3 }
 0x101   : > { %v1015_v26 = vadd.f32 %v1901_v0, %v979_v21  ;;  %v850_v27 = vadd.f32 %v849_v25, %v760_v22  ;;  %v723_v28 = vpop.f32.mrf.mxu0  ;;  %v350_v22 = vld [vmem:[#allocation2 + $0x68] sm:$0xff] }
 0x102   : > { %v1062_v29 = vmax.f32 %v1030_v23, 0.0  ;;  %v812_v31 = vpop.f32.mrf.mxu1 }
 0x103   : > { %v1047_v32 = vmax.f32 %v1015_v26, 0.0  ;;  %v892_v33 = vadd.f32 %v850_v27, %v362_v24  ;;  %v813_v34 = vadd.f32 %v812_v31, %v723_v28 }
 0x104   : > { %1094 = vst.msk [vmem:[%s1909_s14 + $0xb8] sm:$0xff] %vm304_vm0, %v1062_v29 }
 0x105   : > { %1079 = vst.msk [vmem:[%s1909_s14 + $0x40] sm:$0xff] %vm304_vm0, %v1047_v32  ;;  %v959_v35 = vld [vmem:[#allocation2 + $0xc0] sm:$0xff]  ;;  %v877_v36 = vadd.f32 %v813_v34, %v347_v30  ;;  %v366_v34 = vld [vmem:[#allocation2 + $0xe8] sm:$0xff] }
 0x106   : > { %v995_v37 = vmul.f32 %v1895_v61, %v959_v35  ;;  %v944_v38 = vld [vmem:[#allocation2 + $0x48] sm:$0xff]  ;;  %925 = vst.msk [vmem:[#allocation2 + $0xc8] sm:$0xff] %vm304_vm0, %v892_v33 }
 0x107   : > { %v980_v39 = vmul.f32 %v1895_v61, %v944_v38  ;;  %910 = vst.msk [vmem:[#allocation2 + $0x50] sm:$0xff] %vm304_vm0, %v877_v36  ;;  %v763_v40 = vpop.f32.mrf.mxu2 }
 0x108   : > { %v1031_v41 = vadd.f32 %v1901_v0, %v995_v37  ;;  %v852_v43 = vpop.f32.mrf.mxu3 }
 0x109   : > { %v1016_v44 = vadd.f32 %v1901_v0, %v980_v39  ;;  %v853_v45 = vadd.f32 %v852_v43, %v763_v40  ;;  %v725_v46 = vpop.f32.mrf.mxu0  ;;  %v351_v40 = vld [vmem:[#allocation2 + $0x70] sm:$0xff] }
 0x10a   : > { %v1063_v47 = vmax.f32 %v1031_v41, 0.0  ;;  %v814_v49 = vpop.f32.mrf.mxu1 }
 0x10b   : > { %v1048_v50 = vmax.f32 %v1016_v44, 0.0  ;;  %v893_v51 = vadd.f32 %v853_v45, %v363_v42  ;;  %v815_v52 = vadd.f32 %v814_v49, %v725_v46 }
 0x10c   : > { %1095 = vst.msk [vmem:[%s1909_s14 + $0xc0] sm:$0xff] %vm304_vm0, %v1063_v47 }
 0x10d   : > { %1080 = vst.msk [vmem:[%s1909_s14 + $0x48] sm:$0xff] %vm304_vm0, %v1048_v50  ;;  %v960_v53 = vld [vmem:[#allocation2 + $0xc8] sm:$0xff]  ;;  %v878_v54 = vadd.f32 %v815_v52, %v348_v48  ;;  %v367_v52 = vld [vmem:[#allocation2 + $0xf0] sm:$0xff] }
 0x10e   : > { %v996_v55 = vmul.f32 %v1895_v61, %v960_v53  ;;  %v945_v56 = vld [vmem:[#allocation2 + $0x50] sm:$0xff]  ;;  %926 = vst.msk [vmem:[#allocation2 + $0xd0] sm:$0xff] %vm304_vm0, %v893_v51 }
 0x10f   : > { %v981_v57 = vmul.f32 %v1895_v61, %v945_v56  ;;  %911 = vst.msk [vmem:[#allocation2 + $0x58] sm:$0xff] %vm304_vm0, %v878_v54  ;;  %v765_v58 = vpop.f32.mrf.mxu2 }
 0x110   : > { %v1032_v59 = vadd.f32 %v1901_v0, %v996_v55  ;;  %v854_v62 = vpop.f32.mrf.mxu3 }
 0x111   : > { %v1017_v63 = vadd.f32 %v1901_v0, %v981_v57  ;;  %v855_v1 = vadd.f32 %v854_v62, %v765_v58  ;;  %v728_v2 = vpop.f32.mrf.mxu0  ;;  %v352_v58 = vld [vmem:[#allocation2 + $0x78] sm:$0xff] }
 0x112   : > { %v1064_v3 = vmax.f32 %v1032_v59, 0.0  ;;  %v817_v5 = vpop.f32.mrf.mxu1 }
 0x113   : > { %v1049_v6 = vmax.f32 %v1017_v63, 0.0  ;;  %v894_v7 = vadd.f32 %v855_v1, %v364_v60  ;;  %v818_v8 = vadd.f32 %v817_v5, %v728_v2 }
 0x114   : > { %1096 = vst.msk [vmem:[%s1909_s14 + $0xc8] sm:$0xff] %vm304_vm0, %v1064_v3 }
 0x115   : > { %1081 = vst.msk [vmem:[%s1909_s14 + $0x50] sm:$0xff] %vm304_vm0, %v1049_v6  ;;  %v961_v9 = vld [vmem:[#allocation2 + $0xd0] sm:$0xff]  ;;  %v879_v10 = vadd.f32 %v818_v8, %v349_v4  ;;  %v368_v8 = vld [vmem:[#allocation2 + $0xf8] sm:$0xff] }
 0x116   : > { %v997_v11 = vmul.f32 %v1895_v61, %v961_v9  ;;  %v946_v12 = vld [vmem:[#allocation2 + $0x58] sm:$0xff]  ;;  %927 = vst.msk [vmem:[#allocation2 + $0xd8] sm:$0xff] %vm304_vm0, %v894_v7 }
 0x117   : > { %v982_v13 = vmul.f32 %v1895_v61, %v946_v12  ;;  %912 = vst.msk [vmem:[#allocation2 + $0x60] sm:$0xff] %vm304_vm0, %v879_v10  ;;  %v768_v14 = vpop.f32.mrf.mxu2 }
 0x118   : > { %v1033_v15 = vadd.f32 %v1901_v0, %v997_v11  ;;  %v857_v17 = vpop.f32.mrf.mxu3 }
 0x119   : > { %v1018_v18 = vadd.f32 %v1901_v0, %v982_v13  ;;  %v858_v19 = vadd.f32 %v857_v17, %v768_v14  ;;  %v730_v20 = vpop.f32.mrf.mxu0 }
 0x11a   : > { %v1065_v21 = vmax.f32 %v1033_v15, 0.0  ;;  %v819_v23 = vpop.f32.mrf.mxu1 }
 0x11b   : > { %v1050_v24 = vmax.f32 %v1018_v18, 0.0  ;;  %v895_v25 = vadd.f32 %v858_v19, %v365_v16  ;;  %v820_v26 = vadd.f32 %v819_v23, %v730_v20 }
 0x11c   : > { %1097 = vst.msk [vmem:[%s1909_s14 + $0xd0] sm:$0xff] %vm304_vm0, %v1065_v21 }
 0x11d   : > { %1082 = vst.msk [vmem:[%s1909_s14 + $0x58] sm:$0xff] %vm304_vm0, %v1050_v24  ;;  %v962_v27 = vld [vmem:[#allocation2 + $0xd8] sm:$0xff]  ;;  %v880_v28 = vadd.f32 %v820_v26, %v350_v22 }
 0x11e   : > { %v998_v29 = vmul.f32 %v1895_v61, %v962_v27  ;;  %v947_v30 = vld [vmem:[#allocation2 + $0x60] sm:$0xff]  ;;  %928 = vst.msk [vmem:[#allocation2 + $0xe0] sm:$0xff] %vm304_vm0, %v895_v25 }
 0x11f   : > { %v983_v31 = vmul.f32 %v1895_v61, %v947_v30  ;;  %913 = vst.msk [vmem:[#allocation2 + $0x68] sm:$0xff] %vm304_vm0, %v880_v28  ;;  %v770_v32 = vpop.f32.mrf.mxu2 }
 0x120   : > { %v1034_v33 = vadd.f32 %v1901_v0, %v998_v29  ;;  %v859_v35 = vpop.f32.mrf.mxu3 }
 0x121   : > { %v1019_v36 = vadd.f32 %v1901_v0, %v983_v31  ;;  %v860_v37 = vadd.f32 %v859_v35, %v770_v32  ;;  %v733_v38 = vpop.f32.mrf.mxu0 }
 0x122   : > { %v1066_v39 = vmax.f32 %v1034_v33, 0.0  ;;  %v822_v41 = vpop.f32.mrf.mxu1 }
 0x123   : > { %v1051_v42 = vmax.f32 %v1019_v36, 0.0  ;;  %v896_v43 = vadd.f32 %v860_v37, %v366_v34  ;;  %v823_v44 = vadd.f32 %v822_v41, %v733_v38 }
 0x124   : > { %1098 = vst.msk [vmem:[%s1909_s14 + $0xd8] sm:$0xff] %vm304_vm0, %v1066_v39 }
 0x125   : > { %1083 = vst.msk [vmem:[%s1909_s14 + $0x60] sm:$0xff] %vm304_vm0, %v1051_v42  ;;  %v963_v45 = vld [vmem:[#allocation2 + $0xe0] sm:$0xff]  ;;  %v881_v46 = vadd.f32 %v823_v44, %v351_v40 }
 0x126   : > { %v999_v47 = vmul.f32 %v1895_v61, %v963_v45  ;;  %v948_v48 = vld [vmem:[#allocation2 + $0x68] sm:$0xff]  ;;  %929 = vst.msk [vmem:[#allocation2 + $0xe8] sm:$0xff] %vm304_vm0, %v896_v43 }
 0x127   : > { %v984_v49 = vmul.f32 %v1895_v61, %v948_v48  ;;  %914 = vst.msk [vmem:[#allocation2 + $0x70] sm:$0xff] %vm304_vm0, %v881_v46  ;;  %v773_v50 = vpop.f32.mrf.mxu2 }
 0x128   : > { %v1035_v51 = vadd.f32 %v1901_v0, %v999_v47  ;;  %v862_v53 = vpop.f32.mrf.mxu3 }
 0x129   : > { %v1020_v54 = vadd.f32 %v1901_v0, %v984_v49  ;;  %v863_v55 = vadd.f32 %v862_v53, %v773_v50  ;;  %v735_v56 = vpop.f32.mrf.mxu0 }
 0x12a   : > { %v1067_v57 = vmax.f32 %v1035_v51, 0.0  ;;  %v824_v59 = vpop.f32.mrf.mxu1 }
 0x12b   : > { %v1052_v60 = vmax.f32 %v1020_v54, 0.0  ;;  %v897_v62 = vadd.f32 %v863_v55, %v367_v52  ;;  %v825_v63 = vadd.f32 %v824_v59, %v735_v56 }
 0x12c   : > { %1099 = vst.msk [vmem:[%s1909_s14 + $0xe0] sm:$0xff] %vm304_vm0, %v1067_v57 }
 0x12d   : > { %1084 = vst.msk [vmem:[%s1909_s14 + $0x68] sm:$0xff] %vm304_vm0, %v1052_v60  ;;  %v964_v1 = vld [vmem:[#allocation2 + $0xe8] sm:$0xff]  ;;  %v882_v2 = vadd.f32 %v825_v63, %v352_v58 }
 0x12e   : > { %v1000_v3 = vmul.f32 %v1895_v61, %v964_v1  ;;  %v949_v4 = vld [vmem:[#allocation2 + $0x70] sm:$0xff]  ;;  %930 = vst.msk [vmem:[#allocation2 + $0xf0] sm:$0xff] %vm304_vm0, %v897_v62 }
 0x12f   : > { %v985_v5 = vmul.f32 %v1895_v61, %v949_v4  ;;  %915 = vst.msk [vmem:[#allocation2 + $0x78] sm:$0xff] %vm304_vm0, %v882_v2  ;;  %v775_v6 = vpop.f32.mrf.mxu2 }
 0x130   : > { %v1036_v7 = vadd.f32 %v1901_v0, %v1000_v3  ;;  %v864_v9 = vpop.f32.mrf.mxu3 }
 0x131   : > { %v1021_v10 = vadd.f32 %v1901_v0, %v985_v5  ;;  %v865_v11 = vadd.f32 %v864_v9, %v775_v6 }
 0x132   : > { %v1068_v12 = vmax.f32 %v1036_v7, 0.0 }
 0x133   : > { %v1053_v13 = vmax.f32 %v1021_v10, 0.0  ;;  %v898_v14 = vadd.f32 %v865_v11, %v368_v8 }
 0x134   : > { %1100 = vst.msk [vmem:[%s1909_s14 + $0xe8] sm:$0xff] %vm304_vm0, %v1068_v12 }
 0x135   : > { %1085 = vst.msk [vmem:[%s1909_s14 + $0x70] sm:$0xff] %vm304_vm0, %v1053_v13  ;;  %v965_v15 = vld [vmem:[#allocation2 + $0xf0] sm:$0xff] }
 0x136   : > { %v1001_v16 = vmul.f32 %v1895_v61, %v965_v15  ;;  %v950_v17 = vld [vmem:[#allocation2 + $0x78] sm:$0xff]  ;;  %931 = vst.msk [vmem:[#allocation2 + $0xf8] sm:$0xff] %vm304_vm0, %v898_v14 }
 0x137   : > { %v986_v18 = vmul.f32 %v1895_v61, %v950_v17 }
 0x138   : > { %v1037_v19 = vadd.f32 %v1901_v0, %v1001_v16 }
 0x139   : > { %v1022_v20 = vadd.f32 %v1901_v0, %v986_v18 }
 0x13a   : > { %v1069_v21 = vmax.f32 %v1037_v19, 0.0 }
 0x13b   : > { %v1054_v22 = vmax.f32 %v1022_v20, 0.0 }
 0x13c   : > { %1101 = vst.msk [vmem:[%s1909_s14 + $0xf0] sm:$0xff] %vm304_vm0, %v1069_v21 }
 0x13d   : > { %1086 = vst.msk [vmem:[%s1909_s14 + $0x78] sm:$0xff] %vm304_vm0, %v1054_v22  ;;  %v966_v23 = vld [vmem:[#allocation2 + $0xf8] sm:$0xff] }
 0x13e   : > { %v1002_v24 = vmul.f32 %v1895_v61, %v966_v23 }
 0x140   : > { %v1038_v25 = vadd.f32 %v1901_v0, %v1002_v24 }
 0x142   : > { %v1070_v26 = vmax.f32 %v1038_v25, 0.0 }
 0x144   : > { %1102 = vst.msk [vmem:[%s1909_s14 + $0xf8] sm:$0xff] %vm304_vm0, %v1070_v26 }
 0x145   : > { %1605 = shalt.err (!%p1602_p5)
}
 0x146   : > { %s1659_s10 = smov 128   ;;  %s1660_s13 = smov 8  }
 0x147   : > { %1518 = dma.vmem_to_hbm [thread:$0]  (%p1726_p4), %s1118_s29, 4096, %s1120_s30, %s1104_s18, %s1659_s10, %s1659_s10, %s1660_s13  }
 0x148 PF: > { %p1524_p6 = scmp.ge.s32.totalorder %s1656_s20, 2  ;;  %s1134_s14 = sand.u32 1, %s1636_s15  }
 0x149   : > { %s1135_s22 = scalar_lea.sflag [#allocation4], %s1134_s14 }
 0x14a   : > { %p1521_p7 = pnand %p1524_p6, %p1733_p8 }
 0x14c   : > { %p1522_p9 = pneg %p1521_p7 }
 0x14e   : > { %1631 = dma.done.wait (%p1522_p9), %s1135_s22, 4096  }
 0x14f   : > { %1633 = vsyncadd (%p1522_p9), %s1135_s22, 4294963200  ;;  %s17_s20 = sadd.s32 1, %s1656_s20   ;;  %s2112_s15 = smov %s1640_s16 }
 0x150   : > { %p14_p10 = scmp.ge.s32.totalorder %s17_s20, 10   ;;  %s2113_s16 = smov %s1644_s17 }
 0x151   : > { %s2114_s17 = smov %s1739_s28  ;;  %s2115_s18 = smov %s1652_s19 }
 0x152   : > { %s2116_s19 = smov %s2118_s23  ;;  %16 = sbr.rel (!%p14_p10) target bundleno = 4 (0x4), region = 88 }
 0x157   :  { %1141 = vsyncpa [#allocation4], 1 }
 0x158   :  { %1143 = vsyncpa [#allocation4 + $0x1], 1 }

</bundles_post_ra>
